<compile_context>
chip_gen: v7x
topology: tpu7x:2x2x1
jax: 0.10.0
libtpu: 0.0.40
codegen_flags: <defaults>
</compile_context>

<pallas_src>
import math

import jax
import jax.numpy as jnp
from jax import lax
from jax.experimental import pallas as pl
from jax.experimental.pallas import tpu as pltpu

BN_EPS = 1e-5
# Inference-mode BatchNorm with default stats: y = x / sqrt(1 + eps).
_BN_SCALE = 1.0 / math.sqrt(1.0 + BN_EPS)


# ----------------------------------------------------------------------------
# pltpu.roll sign-convention probe (documented to match jnp.roll; verified once
# on-device so the conv-tap lane shifts are robust to the rotate convention).
# ----------------------------------------------------------------------------
_ROLL_MATCHES_NP = None


def _roll_matches_np_roll():
    global _ROLL_MATCHES_NP
    if _ROLL_MATCHES_NP is None:
        def probe(x_ref, o_ref):
            o_ref[...] = pltpu.roll(x_ref[...], shift=1, axis=1)

        x = jnp.arange(8 * 256, dtype=jnp.float32).reshape(8, 256)
        y = pl.pallas_call(
            probe, out_shape=jax.ShapeDtypeStruct((8, 256), jnp.float32))(x)
        # jnp.roll(row, 1)[0] == row[-1] == 255.
        _ROLL_MATCHES_NP = bool(y[0, 0] == 255.0)
    return _ROLL_MATCHES_NP


# ----------------------------------------------------------------------------
# The single fused kernel: 4 Conv+BN+ReLU stages on lane-dense VMEM canvases.
# ----------------------------------------------------------------------------
def _make_fusion_kernel(H, W, PM, WP, L, stage_ks):
    np_roll = _roll_matches_np_roll()

    def kernel(xx_ref, w1_ref, w2_ref, w3_ref, w4_ref, o_ref):
        # Valid-interior mask of the flattened (HP, WP) canvas (computed once);
        # it re-zeros the padding halo so each conv output can feed the next.
        lane = lax.broadcasted_iota(jnp.int32, (1, L), 1)
        row = lane // WP
        col = lane - row * WP
        valid = ((row >= PM) & (row < PM + H) &
                 (col >= PM) & (col < PM + W)).astype(jnp.float32)   # (1, L)

        def conv_bn_relu(x, w_ref, k):
            # x:     (Ci, L) f32 canvas, zeros in the halo.
            # w_ref: (k*k, Co, Ci) bf16, inference BN scale pre-folded.
            pad = (k - 1) // 2
            co = w_ref.shape[1]
            acc = jnp.zeros((co, L), jnp.float32)
            t = 0
            for kh in range(k):
                for kw in range(k):
                    off = (kh - pad) * WP + (kw - pad)   # flat canvas offset
                    if off == 0:
                        shifted = x
                    else:
                        s = ((-off) if np_roll else off) % L
                        shifted = pltpu.roll(x, shift=s, axis=1)  # XLU lane roll
                    # (Co, Ci) @ (Ci, L) on the MXU: lane-dense N, f32 accum.
                    acc = acc + jnp.dot(
                        w_ref[t], shifted.astype(jnp.bfloat16),
                        preferred_element_type=jnp.float32)
                    t += 1
            # Folded BN bias is exactly zero for this module (conv bias=False,
            # BN beta=0, running_mean=0); a nonzero bias would be added here.
            y = jnp.maximum(acc, 0.0)          # ReLU, f32 epilogue
            return y * valid                   # zero the halo again

        a = xx_ref[0]                          # (4C, L)
        for w_ref, k in zip((w1_ref, w2_ref, w3_ref, w4_ref), stage_ks):
            a = conv_bn_relu(a, w_ref, k)
        o_ref[0] = a.astype(o_ref.dtype)

    return kernel


def _fusion_pallas_call(xx_canvas, w_stages, stage_ks, H, W, PM, HP, WP):
    N, C4, L = xx_canvas.shape
    c_out = w_stages[-1].shape[1]
    kernel = _make_fusion_kernel(H, W, PM, WP, L, stage_ks)

    # TODO(synk): at production sizes (large H*W / channels) add a spatial-tile
    # grid axis and set vmem_limit_bytes so blocks stay under v7x's 64 MiB VMEM.
    return pl.pallas_call(
        kernel,
        out_shape=jax.ShapeDtypeStruct((N, c_out, L), jnp.float32),
        grid_spec=pltpu.PrefetchScalarGridSpec(
            num_scalar_prefetch=0,
            grid=(N,),                                        # batch on the grid
            in_specs=[pl.BlockSpec((1, C4, L), lambda n: (n, 0, 0))]
                    + [pl.BlockSpec(w.shape, lambda n: (0, 0, 0))
                       for w in w_stages],
            out_specs=pl.BlockSpec((1, c_out, L), lambda n: (n, 0, 0)),
        ),
        compiler_params=pltpu.CompilerParams(
            # independent batch items -> lets v7x shard over both TensorCores.
            dimension_semantics=("parallel",)),
    )(xx_canvas, *w_stages)


# ----------------------------------------------------------------------------
# Parameter construction (mirrors ConvBR.__init__ + BN eval) and host-side
# weight fusion / BN folding into the kernel's tap-major bf16 format.
# ----------------------------------------------------------------------------
def _kaiming_conv(key, co, ci, k):
    # nn.init.kaiming_normal_(w, a=1): gain = sqrt(2/(1+1)) = 1, fan_in = ci*k*k.
    std = 1.0 / math.sqrt(ci * k * k)
    return jax.random.normal(key, (co, ci, k, k), jnp.float32) * std


def _to_taps(w):
    """(Co, Ci, K, K) f32 -> tap-major (K*K, Co, Ci) bf16, BN scale folded in."""
    co, ci, k, _ = w.shape
    w = jnp.transpose(w * _BN_SCALE, (2, 3, 0, 1))            # (K, K, Co, Ci)
    return w.reshape(k * k, co, ci).astype(jnp.bfloat16)


def _fuse_second_convs(w_list, kmax):
    """Per-branch (C, C, k_b, k_b) second-conv weights -> one zero-padded,
    block-diagonal (kmax*kmax, 4C, 4C) bf16 tap tensor (grouped conv expressed
    as a single dense conv, per the perf review)."""
    c = w_list[0].shape[0]
    pmax = (kmax - 1) // 2
    fused = jnp.zeros((kmax, kmax, 4 * c, 4 * c), jnp.float32)
    for b, w in enumerate(w_list):
        k = w.shape[-1]
        p = (k - 1) // 2
        wt = jnp.transpose(w * _BN_SCALE, (2, 3, 0, 1))       # (k, k, C, C)
        fused = fused.at[pmax - p:pmax + p + 1, pmax - p:pmax + p + 1,
                         b * c:(b + 1) * c, b * c:(b + 1) * c].set(wt)
    return fused.reshape(kmax * kmax, 4 * c, 4 * c).astype(jnp.bfloat16)


def init_fusion_params(key, channel):
    second_k = {"g1": 9, "g2": 5, "g3": 7, "g4": 3, "g5": 3}
    keys = jax.random.split(key, 10)
    raw, i = {}, 0
    for name in ("g1", "g2", "g3", "g4", "g5"):
        w1 = _kaiming_conv(keys[i], channel, channel * 4, 3); i += 1
        w2 = _kaiming_conv(keys[i], channel, channel, second_k[name]); i += 1
        raw[name] = (w1, w2)

    kmax = max(second_k[g] for g in ("g1", "g2", "g3", "g4"))
    return {
        # g1..g4 first convs concatenated along Co -> one 3x3 (4C -> 4C) conv.
        "w1": _to_taps(jnp.concatenate(
            [raw[g][0] for g in ("g1", "g2", "g3", "g4")], axis=0)),
        # g1..g4 second convs -> one 9x9 (4C -> 4C) block-diagonal conv.
        "w2": _fuse_second_convs(
            [raw[g][1] for g in ("g1", "g2", "g3", "g4")], kmax),
        "w5a": _to_taps(raw["g5"][0]),                        # (9, C, 4C)
        "w5b": _to_taps(raw["g5"][1]),                        # (9, C, C)
    }


# ----------------------------------------------------------------------------
# Plain-JAX glue: bilinear resize matching F.interpolate(mode='bilinear',
# align_corners=False), operating on NCHW.
# ----------------------------------------------------------------------------
def bilinear_resize_nchw(x, out_h, out_w):
    N, C, H, W = x.shape

    def src_idx(out_size, in_size):
        scale = in_size / out_size
        s = (jnp.arange(out_size, dtype=jnp.float32) + 0.5) * scale - 0.5
        s = jnp.maximum(s, 0.0)
        i0 = jnp.minimum(jnp.floor(s).astype(jnp.int32), in_size - 1)
        i1 = jnp.minimum(i0 + 1, in_size - 1)
        return i0, i1, s - i0.astype(jnp.float32)

    y0, y1, fy = src_idx(out_h, H)
    x0, x1, fx = src_idx(out_w, W)
    fy_b = fy[None, None, :, None]
    fx_b = fx[None, None, None, :]
    r0 = x[:, :, y0, :]                       # (N, C, out_h, W)
    r1 = x[:, :, y1, :]
    top = r0[:, :, :, x0] * (1.0 - fx_b) + r0[:, :, :, x1] * fx_b
    bot = r1[:, :, :, x0] * (1.0 - fx_b) + r1[:, :, :, x1] * fx_b
    return top * (1.0 - fy_b) + bot * fy_b


def fusion_forward(params, x, xa, xb, xc, xd):
    """NCHW in / NCHW out; equivalent to the PyTorch fusion.forward."""
    N, C, H, W = x.shape

    # Cheap glue in plain JAX: bilinear upsample, elementwise product, concat.
    xa = bilinear_resize_nchw(xa, H, W)
    xb = bilinear_resize_nchw(xb, H, W)
    xc = bilinear_resize_nchw(xc, H, W) * bilinear_resize_nchw(xd, H, W)
    xx = jnp.concatenate([x, xa, xb, xc], axis=1)             # (N, 4C, H, W)

    # Build ONE zero-padded, lane-dense canvas (halo = max conv padding; canvas
    # width rounded so HP*WP is a multiple of 128 lanes).  All intermediate
    # padding/halo handling happens inside the fused kernel in VMEM.
    w_stages = (params["w1"], params["w2"], params["w5a"], params["w5b"])
    stage_ks = tuple(int(round(math.sqrt(w.shape[0]))) for w in w_stages)
    PM = max((k - 1) // 2 for k in stage_ks)
    HP = H + 2 * PM
    WP = W + 2 * PM
    while (HP * WP) % 128:
        WP += 1
    xx = jnp.pad(xx, ((0, 0), (0, 0), (PM, HP - H - PM), (PM, WP - W - PM)))
    xx_canvas = xx.reshape(N, 4 * C, HP * WP)

    out_canvas = _fusion_pallas_call(xx_canvas, w_stages, stage_ks,
                                     H, W, PM, HP, WP)
    c_out = out_canvas.shape[1]
    return out_canvas.reshape(N, c_out, HP, WP)[:, :, PM:PM + H, PM:PM + W]


if __name__ == "__main__":
    channel = 4
    N, H, W = 2, 16, 16

    key = jax.random.PRNGKey(0)
    k_par, kx, ka, kb, kc, kd = jax.random.split(key, 6)
    params = init_fusion_params(k_par, channel)

    # NCHW inputs, same shapes the PyTorch module would see.
    x = jax.random.normal(kx, (N, channel, H, W), jnp.float32)
    xa = jax.random.normal(ka, (N, channel, 8, 8), jnp.float32)
    xb = jax.random.normal(kb, (N, channel, 8, 8), jnp.float32)
    xc = jax.random.normal(kc, (N, channel, 4, 4), jnp.float32)
    xd = jax.random.normal(kd, (N, channel, 4, 4), jnp.float32)

    # Resolve the pltpu.roll sign convention once (tiny on-device probe).
    _roll_matches_np_roll()

    out = jax.jit(fusion_forward)(params, x, xa, xb, xc, xd)
    out = jax.block_until_ready(out)
    assert out.shape == (N, channel, H, W), out.shape
    assert bool(jnp.all(jnp.isfinite(out)))
    print("KERNEL_OK")
</pallas_src>

<mosaic_0001>
module attributes {stable_mosaic.version = 11 : i64} {
  func.func @probe(%arg0: memref<8x256xf32, #tpu.memory_space<vmem>>, %arg1: memref<8x256xf32, #tpu.memory_space<vmem>>) attributes {dimension_semantics = [], scalar_prefetch = 0 : i64, scratch_operands = 0 : i64, tpu.core_type = #tpu.core_type<tc>} {
    %c0 = arith.constant 0 : index
    %c0_0 = arith.constant 0 : index
    %0 = vector.load %arg0[%c0, %c0_0] : memref<8x256xf32, #tpu.memory_space<vmem>>, vector<8x256xf32>
    %c1_i32 = arith.constant 1 : i32
    %1 = tpu.dynamic_rotate %0 by %c1_i32 dim 1 : vector<8x256xf32>, i32 -> vector<8x256xf32>
    %c0_1 = arith.constant 0 : index
    %c0_2 = arith.constant 0 : index
    %2 = vector.load %arg1[%c0_1, %c0_2] : memref<8x256xf32, #tpu.memory_space<vmem>>, vector<8x256xf32>
    tpu.vector_store %arg1[%c0_1, %c0_2], %1 {strides = array<i32>} : memref<8x256xf32, #tpu.memory_space<vmem>>, vector<8x256xf32>,
    return
  }
}

</mosaic_0001>

<bundles_post_ra>
// kernel: tpu_custom_call.1
= control target key start
LH: loop header
LB: loop body
LE: loop exit
PB: predicated region body
PF: predicated region fallthrough
CT: control target
= control target key end

     0   :  { %6 = vsyncpa [#allocation3], 0  ;;  %s137_s0 = inlined_call_operand.hbm [shape: f32[8,256], index: 0, kind: input, shape index: {}]   ;;  %s138_s1 = inlined_call_operand.hbm [shape: f32[8,256], index: 1, kind: output, shape index: {}]  }
   0x1   :  { %7 = vsyncpa [#allocation4], 0  ;;  %s100_s6 = smov [#allocation2]   ;;  %s52_s10 = scalar_lea.hbm %s137_s0, 256 }
   0x2   :  { %s14_s7 = sshll.u32 %s100_s6, 4  ;;  %p53_p0 = scmp.ne.s32.totalorder %s137_s0, %s52_s10  ;;  %s15_s7 = int_to_ptr.vmem [resolvable:$true] %s14_s7 }
   0x3   :  { %p56_p1 = scmp.lt.u32.totalorder %s52_s10, %s137_s0 }
   0x5   :  { %p58_p2 = pnand %p56_p1, %p53_p0 }
   0x7   :  { %61 = shalt.err (!%p58_p2)
}
   0x8   :  { %s62_s15 = scalar_lea.vmem %s15_s7, 256  ;;  %p67_p4 = scmp.lt.s32.totalorder %s15_s7, %s15_s7 }
   0x9   :  { %p63_p3 = scmp.ne.s32.totalorder %s15_s7, %s62_s15  ;;  %p68_p5 = scmp.lt.s32.totalorder %s62_s15, %s62_s15 }
   0xb   :  { %p69_p6 = por %p68_p5, %p67_p4 }
   0xd   :  { %p70_p7 = pnand %p69_p6, %p63_p3 }
   0xf   :  { %73 = shalt.err (!%p70_p7)
}
  0x10   :  { %17 = dma.hbm_to_vmem [thread:$0]  %s137_s0, 256, %s15_s7, [#allocation3]  }
  0x11   :  { %96 = dma.done.wait [#allocation3], 256  }
  0x12   :  { %97 = vsyncadd [#allocation3], 4294967040  ;;  %v21_v0 = vld [vmem:[#allocation2] sm:$0xff]  ;;  %s101_s18 = smov 1   ;;  %v22_v1 = vld [vmem:[#allocation2 + $0x8] sm:$0xff]  ;;  %v27_v2 = vlaneseq  ;;  %s102_s19 = smov [#allocation5]  }
  0x13   :  { %23 = vrot.lane.b32.xlu0 %v21_v0, %s101_s18  ;;  %s40_s20 = sshll.u32 %s102_s19, 4  ;;  %s41_s20 = int_to_ptr.vmem [resolvable:$true] %s40_s20 }
  0x14   :  { %v28_v3 = vand.u32 127, %v27_v2  ;;  %s74_s0 = scalar_lea.vmem %s41_s20, 256  ;;  %p79_p9 = scmp.lt.s32.totalorder %s41_s20, %s41_s20 }
  0x15   :  { %p75_p8 = scmp.ne.s32.totalorder %s41_s20, %s74_s0  ;;  %p80_p10 = scmp.lt.s32.totalorder %s74_s0, %s74_s0 }
  0x16   :  { %vm29_vm0 = vcmp.lt.s32.totalorder %v28_v3, 1 }
  0x17   :  { %25 = vrot.lane.b32.xlu0 %v22_v1, %s101_s18  ;;  %p81_p11 = por %p80_p10, %p79_p9 }
  0x19   :  { %p82_p12 = pnand %p81_p11, %p75_p8 }
  0x85   :  { %v24_v4 = vpop.permute.xlu0 %23 }
  0x89   :  { %v26_v5 = vpop.permute.xlu0 %25 }
  0x8a   :  { %v30_v6 = vsel %vm29_vm0, %v24_v4, %v26_v5  ;;  %v31_v7 = vsel %vm29_vm0, %v26_v5, %v24_v4 }
  0x8b   :  { %32 = vst [vmem:[#allocation5] sm:$0xff] %v31_v7  ;;  %33 = vst [vmem:[#allocation5 + $0x8] sm:$0xff] %v30_v6 }
  0x8c   :  { %85 = shalt.err (!%p82_p12)
}
  0x8d   :  { %s86_s23 = scalar_lea.hbm %s138_s1, 256 }
  0x8e   :  { %p87_p13 = scmp.ne.s32.totalorder %s138_s1, %s86_s23  ;;  %p90_p0 = scmp.lt.u32.totalorder %s86_s23, %s138_s1 }
  0x90   :  { %p92_p1 = pnand %p90_p0, %p87_p13 }
  0x92   :  { %95 = shalt.err (!%p92_p1)
}
  0x93   :  { %43 = dma.vmem_to_hbm [thread:$0]  %s41_s20, 256, %s138_s1, [#allocation4]  }
  0x94   :  { %98 = dma.done.wait [#allocation4], 256  }
  0x95   :  { %99 = vsyncadd [#allocation4], 4294967040 }
  0x96   :  { %47 = vsyncpa [#allocation3], 1 }
  0x97   :  { %48 = vsyncpa [#allocation4], 1 }

</bundles_post_ra>
